<compile_context>
chip_gen: v6e
topology: v6e:2x2x1
jax: 0.10.0
libtpu: 0.0.40
codegen_flags: <defaults>
</compile_context>

<pallas_src>
import functools

import jax
import jax.numpy as jnp
from jax.experimental import pallas as pl
from jax.experimental.pallas import tpu as pltpu


def _ce_kernel(x_ref, y_ref, out_ref, acc_ref, *, total_rows, upcast_early):
    """One (tb, C) logits tile of softmax cross-entropy, accumulated per core.

    x_ref:   (tb, C) logits (native dtype; bf16 stays bf16 unless upcast_early)
    y_ref:   (padded_rows, 1) int32 labels (resident block, sliced per tile)
    out_ref: (8, 128) f32 lane-dense per-partition partial (written at last step)
    acc_ref: (tb, 1)  f32 VMEM vector accumulator (per core)
    """
    step = pl.program_id(1)
    steps_per_part = pl.num_programs(1)
    gb = pl.program_id(0) * steps_per_part + step   # unclamped global block id
    tb, c = x_ref.shape

    @pl.when(step == 0)
    def _init():
        acc_ref[...] = jnp.zeros_like(acc_ref)

    x = x_ref[...]                                   # (tb, C) native dtype
    if upcast_early:
        x = x.astype(jnp.float32)                    # v5-and-older: no bf16 VPU

    # Labels for this tile from the resident, padded label block.
    start = gb * tb
    if tb % 8 == 0:
        start = pl.multiple_of(start, 8)
    y = y_ref[pl.ds(start, tb), :]                   # (tb, 1) int32

    # Numerically stable LSE; shift first so the raw tile's live range ends at
    # the subtract, then upcast only at the exp input (f32 accumulation).
    m = jnp.max(x, axis=-1, keepdims=True)           # (tb, 1) native
    xs = x - m                                       # (tb, C) native
    s = jnp.sum(jnp.exp(xs.astype(jnp.float32)), axis=-1, keepdims=True)  # f32
    lane = jax.lax.broadcasted_iota(jnp.int32, (tb, c), 1)
    # One-hot select from the shifted tile; the row sum picks a single entry,
    # so it is exact in any dtype.
    tgt = jnp.sum(jnp.where(lane == y, xs, jnp.zeros_like(xs)),
                  axis=-1, keepdims=True).astype(jnp.float32)             # (tb,1)
    per_row = jnp.log(s) - tgt                                            # (tb,1)

    # Mask rows past the true batch: partial last tile AND phantom tiles from
    # the 2-way core split when the tile count is odd.
    row = gb * tb + jax.lax.broadcasted_iota(jnp.int32, (tb, 1), 0)
    per_row = jnp.where(row < total_rows, per_row, 0.0)

    acc_ref[...] += per_row                          # vector accumulate, no XLU

    @pl.when(step == steps_per_part - 1)
    def _finalize():
        part = jnp.sum(acc_ref[...], axis=0, keepdims=True)   # (1, 1)
        mean = part * jnp.float32(1.0 / total_rows)            # global-B mean
        out_ref[...] = jnp.broadcast_to(mean, out_ref.shape)   # lane-dense store


def _vmem_capacity_bytes():
    try:
        return int(pltpu.get_tpu_info().vmem_capacity_bytes)
    except Exception:
        kind = jax.devices()[0].device_kind.lower()
        return (64 << 20) if ("v7" in kind or "tpu7" in kind) else (128 << 20)


def _has_bf16_vpu():
    kind = jax.devices()[0].device_kind.lower()
    return not any(g in kind for g in ("v2", "v3", "v4", "v5"))


def _choose_block_rows(batch, classes, itemsize, vmem_capacity):
    """Largest multiple-of-8 row tile within a generation-aware byte budget."""
    if batch <= 8:
        return batch                      # block == full batch dim is legal
    tile_budget = max(2 << 20, vmem_capacity // 6)   # ~10.7 MiB v7x, ~21 MiB v5e/v6e
    rows = tile_budget // max(1, classes * itemsize)
    rows = max(8, min(rows, batch))       # no artificial row cap
    return (rows // 8) * 8


@functools.partial(jax.jit, static_argnames=("l", "block_rows"))
def my_loss(x, y, l=1.0, block_rows=None):
    """JAX/Pallas equivalent of MyLoss.forward (CFG.l == 1.0 path).

    x: (B, C) float32 or bfloat16 logits;  y: (B,) int labels in [0, C).
    Returns (total_loss, cross_entropy, curvature).
    """
    if l != 1.0:
        # TODO(synk): Hessian-based curvature term is not translatable to a
        # forward Pallas kernel; refuse rather than silently return ce * l.
        raise NotImplementedError("MyLoss Pallas port only supports CFG.l == 1.0")

    batch, classes = x.shape
    itemsize = x.dtype.itemsize
    vmem_capacity = _vmem_capacity_bytes()

    tb = block_rows if block_rows is not None else _choose_block_rows(
        batch, classes, itemsize, vmem_capacity)
    tb = int(min(tb, batch))
    nb = -(-batch // tb)                       # real logits tiles
    nparts = 2 if nb >= 2 else 1               # v7x megacore; harmless on 1-TC chips
    steps = -(-nb // nparts)                   # tiles per partition (may incl. 1 phantom)
    padded_rows = nparts * steps * tb

    # Pad the (tiny) label vector so the resident in-kernel slice is always in
    # bounds, including for the phantom tile of the 2-way split.
    y2d = jnp.pad(y.reshape(batch, 1).astype(jnp.int32),
                  ((0, padded_rows - batch), (0, 0)))

    # VMEM accounting: 2 pipeline buffers for the logits tile + resident
    # labels + accumulator + output + headroom; capped at 3/4 of physical VMEM.
    x_block_bytes = tb * classes * itemsize
    aux_bytes = padded_rows * 4 + tb * 4 + nparts * 8 * 128 * 4 + (2 << 20)
    needed = 2 * x_block_bytes + aux_bytes
    vmem_cap = vmem_capacity * 3 // 4
    if needed > vmem_cap:
        # TODO(synk): online-LSE (flash-softmax) tiling over the class axis.
        raise NotImplementedError(
            f"class dim {classes} too large for single-tile LSE "
            f"({needed} B needed > {vmem_cap} B VMEM budget)")
    vmem_limit = int(min(vmem_cap, max(32 << 20, needed)))

    upcast_early = (x.dtype != jnp.float32) and (not _has_bf16_vpu())
    kernel = functools.partial(_ce_kernel, total_rows=batch,
                               upcast_early=upcast_early)

    def x_map(p, i):
        # Clamp phantom blocks (odd nb, 2-way split) to the last real block;
        # the in-kernel row mask zeroes their contribution.
        return (jnp.minimum(p * steps + i, nb - 1), 0)

    partials = pl.pallas_call(
        kernel,
        out_shape=jax.ShapeDtypeStruct((nparts * 8, 128), jnp.float32),
        grid_spec=pltpu.PrefetchScalarGridSpec(
            num_scalar_prefetch=0,
            grid=(nparts, steps),
            in_specs=[
                pl.BlockSpec((tb, classes), x_map),
                pl.BlockSpec((padded_rows, 1), lambda p, i: (0, 0)),  # resident labels
            ],
            out_specs=pl.BlockSpec((8, 128), lambda p, i: (p, 0)),
            scratch_shapes=[pltpu.VMEM((tb, 1), jnp.float32)],
        ),
        compiler_params=pltpu.CompilerParams(
            dimension_semantics=("parallel", "arbitrary"),
            vmem_limit_bytes=vmem_limit,
        ),
    )(x, y2d)

    ce = jnp.sum(partials[0::8, 0])            # one lane-dense block per core
    curvature = jnp.float32(0.0)               # CFG.l == 1.0 branch
    total = ce * jnp.float32(l) + curvature * jnp.float32(1.0 - l)
    return total, ce, curvature


if __name__ == "__main__":
    key = jax.random.PRNGKey(0)
    kx, ky = jax.random.split(key)

    def ref_ce(x, y):
        logp = jax.nn.log_softmax(x.astype(jnp.float32), axis=-1)
        return -jnp.mean(logp[jnp.arange(x.shape[0]), y])

    # 1) Auto-sized tile (whole batch in one block), f32.
    B, C = 64, 128
    x = jax.random.normal(kx, (B, C), dtype=jnp.float32)
    y = jax.random.randint(ky, (B,), 0, C, dtype=jnp.int32)
    total, ce, curv = my_loss(x, y, l=1.0)
    jax.block_until_ready((total, ce, curv))
    ref = ref_ce(x, y)
    assert jnp.allclose(ce, ref, atol=1e-5, rtol=1e-5), (ce, ref)
    assert jnp.allclose(total, ref, atol=1e-5, rtol=1e-5)
    assert float(curv) == 0.0

    # 2) Odd tile count (nb=5) -> 2-way split with one phantom (masked) tile.
    B2 = 40
    x2 = jax.random.normal(jax.random.PRNGKey(1), (B2, C), dtype=jnp.float32)
    y2 = jax.random.randint(jax.random.PRNGKey(2), (B2,), 0, C, dtype=jnp.int32)
    _, ce2, _ = my_loss(x2, y2, l=1.0, block_rows=8)
    jax.block_until_ready(ce2)
    assert jnp.allclose(ce2, ref_ce(x2, y2), atol=1e-5, rtol=1e-5), ce2

    # 3) Batch not a multiple of block_rows (partial last tile) + phantom tile.
    B3 = 44
    x3 = jax.random.normal(jax.random.PRNGKey(3), (B3, C), dtype=jnp.float32)
    y3 = jax.random.randint(jax.random.PRNGKey(4), (B3,), 0, C, dtype=jnp.int32)
    _, ce3, _ = my_loss(x3, y3, l=1.0, block_rows=16)
    jax.block_until_ready(ce3)
    assert jnp.allclose(ce3, ref_ce(x3, y3), atol=1e-5, rtol=1e-5), ce3

    # 4) bf16 logits: native-dtype shift path (exp/log/sums stay f32).
    B4 = 32
    x4 = jax.random.normal(jax.random.PRNGKey(5), (B4, C), dtype=jnp.bfloat16)
    y4 = jax.random.randint(jax.random.PRNGKey(6), (B4,), 0, C, dtype=jnp.int32)
    _, ce4, _ = my_loss(x4, y4, l=1.0, block_rows=8)
    jax.block_until_ready(ce4)
    assert jnp.allclose(ce4, ref_ce(x4, y4), atol=1e-2, rtol=1e-2), ce4

    print("KERNEL_OK")
</pallas_src>

<mosaic_0001>
module attributes {stable_mosaic.version = 11 : i64} {
  func.func @_ce_kernel(%arg0: i32, %arg1: i32, %arg2: memref<64x128xf32, #tpu.memory_space<vmem>>, %arg3: memref<64x1xi32, #tpu.memory_space<vmem>>, %arg4: memref<8x128xf32, #tpu.memory_space<vmem>>, %arg5: memref<64x1xf32, #tpu.memory_space<vmem>>) attributes {dimension_semantics = [#tpu.dimension_semantics<parallel>, #tpu.dimension_semantics<arbitrary>], iteration_bounds = array<i64: 1, 1>, scalar_prefetch = 0 : i64, scratch_operands = 1 : i64, tpu.core_type = #tpu.core_type<tc>, window_params = [{transform_indices = @transform_0, window_bounds = array<i64: 64, 128>}, {pipeline_mode = #tpu.pipeline_mode<synchronous>, transform_indices = @transform_1, window_bounds = array<i64: 64, 1>}, {transform_indices = @transform_2, window_bounds = array<i64: 8, 128>}]} {
    %c1_i32 = arith.constant 1 : i32
    %0 = arith.muli %arg0, %c1_i32 : i32
    %1 = arith.addi %0, %arg1 : i32
    %c0_i32 = arith.constant 0 : i32
    %2 = arith.cmpi eq, %arg1, %c0_i32 : i32
    %3 = arith.extui %2 : i1 to i32
    %c0_i32_0 = arith.constant 0 : i32
    %4 = arith.cmpi ne, %3, %c0_i32_0 : i32
    scf.if %4 {
      %cst_15 = arith.constant 0.000000e+00 : f32
      %40 = vector.broadcast %cst_15 : f32 to vector<64x1xf32>
      %c0_16 = arith.constant 0 : index
      %c0_17 = arith.constant 0 : index
      %41 = vector.load %arg5[%c0_16, %c0_17] : memref<64x1xf32, #tpu.memory_space<vmem>>, vector<64x1xf32>
      tpu.vector_store %arg5[%c0_16, %c0_17], %40 {strides = array<i32>} : memref<64x1xf32, #tpu.memory_space<vmem>>, vector<64x1xf32>,
    } else {
    }
    %c0 = arith.constant 0 : index
    %c0_1 = arith.constant 0 : index
    %5 = vector.load %arg2[%c0, %c0_1] : memref<64x128xf32, #tpu.memory_space<vmem>>, vector<64x128xf32>
    %c64_i32 = arith.constant 64 : i32
    %6 = arith.muli %1, %c64_i32 : i32
    %7 = tpu.assume_multiple %6, 8 : i32
    %8 = arith.index_cast %7 : i32 to index
    %c0_2 = arith.constant 0 : index
    %9 = vector.load %arg3[%8, %c0_2] : memref<64x1xi32, #tpu.memory_space<vmem>>, vector<64x1xi32>
    %cst = arith.constant dense<0xFF800000> : vector<64xf32>
    %10 = vector.multi_reduction <maximumf>, %5, %cst [1] : vector<64x128xf32> to vector<64xf32>
    %11 = vector.shape_cast %10 : vector<64xf32> to vector<64x1xf32>
    %12 = vector.broadcast %11 : vector<64x1xf32> to vector<64x128xf32>
    %13 = arith.subf %5, %12 : vector<64x128xf32>
    %14 = math.exp %13 : vector<64x128xf32>
    %cst_3 = arith.constant dense<0.000000e+00> : vector<64xf32>
    %15 = vector.multi_reduction <add>, %14, %cst_3 [1] : vector<64x128xf32> to vector<64xf32>
    %16 = vector.shape_cast %15 : vector<64xf32> to vector<64x1xf32>
    %17 = tpu.iota {dimensions = array<i32: 1>} : vector<64x128xi32>
    %18 = vector.broadcast %9 : vector<64x1xi32> to vector<64x128xi32>
    %19 = arith.cmpi eq, %17, %18 : vector<64x128xi32>
    %cst_4 = arith.constant 0.000000e+00 : f32
    %20 = vector.broadcast %cst_4 : f32 to vector<64x128xf32>
    %21 = arith.select %19, %13, %20 : vector<64x128xi1>, vector<64x128xf32>
    %cst_5 = arith.constant dense<0.000000e+00> : vector<64xf32>
    %22 = vector.multi_reduction <add>, %21, %cst_5 [1] : vector<64x128xf32> to vector<64xf32>
    %23 = vector.shape_cast %22 : vector<64xf32> to vector<64x1xf32>
    %24 = math.log %16 : vector<64x1xf32>
    %25 = arith.subf %24, %23 : vector<64x1xf32>
    %c64_i32_6 = arith.constant 64 : i32
    %26 = arith.muli %1, %c64_i32_6 : i32
    %27 = tpu.iota {dimensions = array<i32: 0>} : vector<64x1xi32>
    %28 = vector.broadcast %26 : i32 to vector<64x1xi32>
    %29 = arith.addi %28, %27 : vector<64x1xi32>
    %c64_i32_7 = arith.constant 64 : i32
    %30 = vector.broadcast %c64_i32_7 : i32 to vector<64x1xi32>
    %31 = arith.cmpi slt, %29, %30 : vector<64x1xi32>
    %cst_8 = arith.constant 0.000000e+00 : f32
    %32 = vector.broadcast %cst_8 : f32 to vector<64x1xf32>
    %33 = arith.select %31, %25, %32 : vector<64x1xi1>, vector<64x1xf32>
    %c0_9 = arith.constant 0 : index
    %c0_10 = arith.constant 0 : index
    %34 = vector.load %arg5[%c0_9, %c0_10] : memref<64x1xf32, #tpu.memory_space<vmem>>, vector<64x1xf32>
    %35 = arith.addf %34, %33 : vector<64x1xf32>
    %c0_11 = arith.constant 0 : index
    %c0_12 = arith.constant 0 : index
    %36 = vector.load %arg5[%c0_11, %c0_12] : memref<64x1xf32, #tpu.memory_space<vmem>>, vector<64x1xf32>
    tpu.vector_store %arg5[%c0_11, %c0_12], %35 {strides = array<i32>} : memref<64x1xf32, #tpu.memory_space<vmem>>, vector<64x1xf32>,
    %c0_i32_13 = arith.constant 0 : i32
    %37 = arith.cmpi eq, %arg1, %c0_i32_13 : i32
    %38 = arith.extui %37 : i1 to i32
    %c0_i32_14 = arith.constant 0 : i32
    %39 = arith.cmpi ne, %38, %c0_i32_14 : i32
    scf.if %39 {
      %c0_15 = arith.constant 0 : index
      %c0_16 = arith.constant 0 : index
      %40 = vector.load %arg5[%c0_15, %c0_16] : memref<64x1xf32, #tpu.memory_space<vmem>>, vector<64x1xf32>
      %cst_17 = arith.constant dense<0.000000e+00> : vector<1xf32>
      %41 = vector.multi_reduction <add>, %40, %cst_17 [0] : vector<64x1xf32> to vector<1xf32>
      %42 = vector.shape_cast %41 : vector<1xf32> to vector<1x1xf32>
      %cst_18 = arith.constant 1.562500e-02 : f32
      %43 = vector.broadcast %cst_18 : f32 to vector<1x1xf32>
      %44 = arith.mulf %42, %43 : vector<1x1xf32>
      %45 = vector.shape_cast %44 : vector<1x1xf32> to vector<1x1xf32>
      %46 = vector.broadcast %45 : vector<1x1xf32> to vector<8x128xf32>
      %c0_19 = arith.constant 0 : index
      %c0_20 = arith.constant 0 : index
      %47 = vector.load %arg4[%c0_19, %c0_20] : memref<8x128xf32, #tpu.memory_space<vmem>>, vector<8x128xf32>
      tpu.vector_store %arg4[%c0_19, %c0_20], %46 {strides = array<i32>} : memref<8x128xf32, #tpu.memory_space<vmem>>, vector<8x128xf32>,
    } else {
    }
    return
  }
  func.func @transform_0(%arg0: i32, %arg1: i32) -> (i32, i32) {
    %c1_i32 = arith.constant 1 : i32
    %0 = arith.muli %arg0, %c1_i32 : i32
    %1 = arith.addi %0, %arg1 : i32
    %c0_i32 = arith.constant 0 : i32
    %2 = arith.minsi %1, %c0_i32 : i32
    %c0_i32_0 = arith.constant 0 : i32
    %c0_i32_1 = arith.constant 0 : i32
    return %2, %c0_i32_0 : i32, i32
  }
  func.func @transform_1(%arg0: i32, %arg1: i32) -> (i32, i32) {
    %c0_i32 = arith.constant 0 : i32
    %c0_i32_0 = arith.constant 0 : i32
    %c0_i32_1 = arith.constant 0 : i32
    return %c0_i32, %c0_i32_0 : i32, i32
  }
  func.func @transform_2(%arg0: i32, %arg1: i32) -> (i32, i32) {
    %c0_i32 = arith.constant 0 : i32
    %c0_i32_0 = arith.constant 0 : i32
    return %arg0, %c0_i32 : i32, i32
  }
}

</mosaic_0001>

<bundles_post_ra>
// kernel: my_loss.1
= control target key start
LH: loop header
LB: loop body
LE: loop exit
PB: predicated region body
PF: predicated region fallthrough
CT: control target
= control target key end

     0   :  { %v357_v2 = vmov 0   ;;  %v131_v46 = vlaneseq  ;;  %vm48_vm5 = vcmask 7168   ;;  %s457_s0 = inlined_call_operand.vmem [shape: f32[64,128], index: 0, kind: input, shape index: {}]   ;;  %s458_s1 = inlined_call_operand.vmem [shape: s32[64,1], index: 1, kind: input, shape index: {}]   ;;  %s459_s2 = inlined_call_operand.vmem [shape: f32[8,128], index: 2, kind: output, shape index: {}]  }
   0x1   :  { %v59_v0 = vld [vmem:[%s457_s0 + $0x10] sm:$0xff]  ;;  %v57_v1 = vld [vmem:[%s457_s0] sm:$0xff]  ;;  %324 = vset.pattern.permute.xlu1 %v357_v2  ;;  %323 = vset.pattern.permute.xlu0 %v357_v2  ;;  %v60_v3 = vld [vmem:[%s457_s0 + $0x18] sm:$0xff] }
   0x2   :  { %79 = vmax.xlane.f32.xlu1 %v59_v0  ;;  %75 = vmax.xlane.f32.xlu0 %v57_v1  ;;  %v58_v4 = vld [vmem:[%s457_s0 + $0x8] sm:$0xff]  ;;  %v61_v6 = vld [vmem:[%s457_s0 + $0x20] sm:$0xff]  ;;  %v64_v7 = vld [vmem:[%s457_s0 + $0x38] sm:$0xff]  ;;  %v132_v50 = vand.u32 127, %v131_v46 }
   0x3   :  { %v62_v5 = vld [vmem:[%s457_s0 + $0x28] sm:$0xff]  ;;  %v63_v8 = vld [vmem:[%s457_s0 + $0x30] sm:$0xff]  ;;  %v67_v11 = vld [vmem:[%s458_s1] sm:$0xff] }
   0x4   :  { %v68_v9 = vld [vmem:[%s458_s1 + $0x8] sm:$0xff]  ;;  %v69_v10 = vld [vmem:[%s458_s1 + $0x10] sm:$0xff]  ;;  %v70_v12 = vld [vmem:[%s458_s1 + $0x18] sm:$0xff] }
   0x5   :  { %v71_v13 = vld [vmem:[%s458_s1 + $0x20] sm:$0xff]  ;;  %v72_v14 = vld [vmem:[%s458_s1 + $0x28] sm:$0xff]  ;;  %v73_v15 = vld [vmem:[%s458_s1 + $0x30] sm:$0xff] }
   0x6   :  { %81 = vmax.xlane.f32.xlu1 %v60_v3  ;;  %77 = vmax.xlane.f32.xlu0 %v58_v4  ;;  %v74_v16 = vld [vmem:[%s458_s1 + $0x38] sm:$0xff] }
   0xa   :  { %85 = vmax.xlane.f32.xlu1 %v62_v5  ;;  %83 = vmax.xlane.f32.xlu0 %v61_v6 }
   0xe   :  { %89 = vmax.xlane.f32.xlu1 %v64_v7  ;;  %87 = vmax.xlane.f32.xlu0 %v63_v8 }
  0x1f   :  { %137 = vperm.xlu1 %324, %v68_v9  }
  0x23   :  { %140 = vperm.xlu1 %324, %v69_v10  }
  0x24   :  { %134 = vperm.xlu0 %323, %v67_v11  }
  0x27   :  { %143 = vperm.xlu1 %324, %v70_v12  }
  0x2b   :  { %146 = vperm.xlu1 %324, %v71_v13  }
  0x2f   :  { %149 = vperm.xlu1 %324, %v72_v14  }
  0x33   :  { %152 = vperm.xlu1 %324, %v73_v15  }
  0x37   :  { %155 = vperm.xlu1 %324, %v74_v16  }
  0x8b   :  { %v80_v17 = vpop.xlane.xlu1 %79  ;;  %v76_v18 = vpop.xlane.xlu0 %75 }
  0x8c   :  { %v91_v19 = vsub.f32 %v57_v1, %v76_v18  ;;  %v93_v25 = vsub.f32 %v59_v0, %v80_v17  ;;  %v358_v0 = vmov 0.0  }
  0x8d   :  { %50 = vst.msk [vmem:[#allocation2 + $0x8] sm:$0xff] %vm48_vm5, %v358_v0  ;;  %49 = vst.msk [vmem:[#allocation2] sm:$0xff] %vm48_vm5, %v358_v0 }
  0x8e   :  { %v99_v20 = vmul.f32 1.442695, %v91_v19  ;;  %v103_v32 = vmul.f32 1.442695, %v93_v25  ;;  %51 = vst.msk [vmem:[#allocation2 + $0x10] sm:$0xff] %vm48_vm5, %v358_v0  ;;  %52 = vst.msk [vmem:[#allocation2 + $0x18] sm:$0xff] %vm48_vm5, %v358_v0 }
  0x8f   :  { %v82_v21 = vpop.xlane.xlu1 %81  ;;  %v78_v22 = vpop.xlane.xlu0 %77  ;;  %53 = vst.msk [vmem:[#allocation2 + $0x20] sm:$0xff] %vm48_vm5, %v358_v0  ;;  %54 = vst.msk [vmem:[#allocation2 + $0x28] sm:$0xff] %vm48_vm5, %v358_v0 }
  0x90   :  { %v94_v23 = vsub.f32 %v60_v3, %v82_v21  ;;  %v92_v24 = vsub.f32 %v58_v4, %v78_v22  ;;  %325 = vpow2.f32 %v99_v20  ;;  %55 = vst.msk [vmem:[#allocation2 + $0x30] sm:$0xff] %vm48_vm5, %v358_v0  ;;  %56 = vst.msk [vmem:[#allocation2 + $0x38] sm:$0xff] %vm48_vm5, %v358_v0 }
  0x92   :  { %v105_v26 = vmul.f32 1.442695, %v94_v23  ;;  %v101_v27 = vmul.f32 1.442695, %v92_v24 }
  0x93   :  { %v86_v28 = vpop.xlane.xlu1 %85  ;;  %v84_v29 = vpop.xlane.xlu0 %83 }
  0x94   :  { %327 = vpow2.f32 %v105_v26  ;;  %v96_v30 = vsub.f32 %v62_v5, %v86_v28  ;;  %v422_v31 = vsub.f32 %v61_v6, %v84_v29  ;;  %v247_v21 = vld [vmem:[#allocation2] sm:$0xff] }
  0x95   :  { %329 = vpow2.f32 %v101_v27 }
  0x96   :  { %v109_v33 = vmul.f32 1.442695, %v96_v30  ;;  %v107_v35 = vmul.f32 1.442695, %v422_v31 }
  0x97   :  { %v90_v34 = vpop.xlane.xlu1 %89  ;;  %v88_v36 = vpop.xlane.xlu0 %87 }
  0x98   :  { %331 = vpow2.f32 %v109_v33  ;;  %v98_v37 = vsub.f32 %v64_v7, %v90_v34  ;;  %v425_v38 = vsub.f32 %v63_v8, %v88_v36  ;;  %v252_v33 = vld [vmem:[#allocation2 + $0x28] sm:$0xff] }
  0x99   :  { %333 = vpow2.f32 %v103_v32 }
  0x9a   :  { %v113_v39 = vmul.f32 1.442695, %v98_v37  ;;  %335 = vpow2.f32 %v107_v35  ;;  %v111_v41 = vmul.f32 1.442695, %v425_v38 }
  0x9b   :  { %v138_v40 = vpop.permute.xlu1 %137 }
  0x9c   :  { %337 = vpow2.f32 %v113_v39  ;;  %vm158_vm0 = vcmp.eq.s32.totalorder %v132_v50, %v138_v40 }
  0x9d   :  { %v326_v42 = vpop.eup %325  ;;  %339 = vpow2.f32 %v111_v41  ;;  %v166_v57 = vsel %vm158_vm0, %v92_v24, 0.0 }
  0x9e   :  { %115 = vadd.xlane.f32.xlu1 %v326_v42 }
  0x9f   :  { %v141_v43 = vpop.permute.xlu1 %140  ;;  %v135_v56 = vpop.permute.xlu0 %134 }
  0xa0   :  { %vm157_vm1 = vcmp.eq.s32.totalorder %v132_v50, %v135_v56  ;;  %vm159_vm3 = vcmp.eq.s32.totalorder %v132_v50, %v141_v43  ;;  %v253_v56 = vld [vmem:[#allocation2 + $0x30] sm:$0xff] }
  0xa1   :  { %v328_v44 = vpop.eup %327  ;;  %v165_v60 = vsel %vm157_vm1, %v91_v19, 0.0  ;;  %v167_v63 = vsel %vm159_vm3, %v93_v25, 0.0  ;;  %v250_v19 = vld [vmem:[#allocation2 + $0x18] sm:$0xff] }
  0xa2   :  { %v330_v45 = vpop.eup %329  ;;  %121 = vadd.xlane.f32.xlu1 %v328_v44 }
  0xa3   :  { %117 = vadd.xlane.f32.xlu0 %v330_v45  ;;  %v144_v47 = vpop.permute.xlu1 %143  ;;  %v254_v45 = vld [vmem:[#allocation2 + $0x38] sm:$0xff] }
  0xa4   :  { %vm160_vm2 = vcmp.eq.s32.totalorder %v132_v50, %v144_v47 }
  0xa5   :  { %v332_v48 = vpop.eup %331  ;;  %v168_v59 = vsel %vm160_vm2, %v94_v23, 0.0  ;;  %v248_v23 = vld [vmem:[#allocation2 + $0x8] sm:$0xff] }
  0xa6   :  { %v334_v49 = vpop.eup %333  ;;  %125 = vadd.xlane.f32.xlu1 %v332_v48 }
  0xa7   :  { %119 = vadd.xlane.f32.xlu0 %v334_v49  ;;  %v147_v51 = vpop.permute.xlu1 %146  ;;  %v336_v52 = vpop.eup %335 }
  0xa8   :  { %vm161_vm6 = vcmp.eq.s32.totalorder %v132_v50, %v147_v51 }
  0xa9   :  { %v338_v53 = vpop.eup %337  ;;  %v169_v2 = vsel %vm161_vm6, %v422_v31, 0.0 }
  0xaa   :  { %129 = vadd.xlane.f32.xlu1 %v338_v53  ;;  %v340_v55 = vpop.eup %339 }
  0xab   :  { %123 = vadd.xlane.f32.xlu0 %v336_v52  ;;  %v150_v54 = vpop.permute.xlu1 %149 }
  0xac   :  { %vm162_vm4 = vcmp.eq.s32.totalorder %v132_v50, %v150_v54 }
  0xad   :  { %v170_v62 = vsel %vm162_vm4, %v96_v30, 0.0 }
  0xae   :  { %175 = vadd.xlane.f32.xlu1 %v166_v57 }
  0xaf   :  { %127 = vadd.xlane.f32.xlu0 %v340_v55  ;;  %v153_v58 = vpop.permute.xlu1 %152 }
  0xb0   :  { %vm163_vm8 = vcmp.eq.s32.totalorder %v132_v50, %v153_v58 }
  0xb1   :  { %v171_v3 = vsel %vm163_vm8, %v425_v38, 0.0  ;;  %v249_v38 = vld [vmem:[#allocation2 + $0x10] sm:$0xff] }
  0xb2   :  { %179 = vadd.xlane.f32.xlu1 %v168_v59 }
  0xb3   :  { %173 = vadd.xlane.f32.xlu0 %v165_v60  ;;  %v156_v61 = vpop.permute.xlu1 %155 }
  0xb4   :  { %vm164_vm7 = vcmp.eq.s32.totalorder %v132_v50, %v156_v61  ;;  %v251_v50 = vld [vmem:[#allocation2 + $0x20] sm:$0xff] }
  0xb5   :  { %v172_v1 = vsel %vm164_vm7, %v98_v37, 0.0 }
  0xb6   :  { %183 = vadd.xlane.f32.xlu1 %v170_v62 }
  0xb7   :  { %177 = vadd.xlane.f32.xlu0 %v167_v63 }
  0xba   :  { %187 = vadd.xlane.f32.xlu1 %v172_v1 }
  0xbb   :  { %181 = vadd.xlane.f32.xlu0 %v169_v2 }
  0xbf   :  { %185 = vadd.xlane.f32.xlu0 %v171_v3 }
 0x127   :  { %v116_v4 = vpop.xlane.xlu1 %115 }
 0x128   :  { %341 = vlog2.f32 %v116_v4 }
 0x12b   :  { %v122_v5 = vpop.xlane.xlu1 %121 }
 0x12c   :  { %v118_v6 = vpop.xlane.xlu0 %117  ;;  %343 = vlog2.f32 %v122_v5 }
 0x12d   :  { %345 = vlog2.f32 %v118_v6 }
 0x12f   :  { %v126_v7 = vpop.xlane.xlu1 %125 }
 0x130   :  { %v120_v8 = vpop.xlane.xlu0 %119  ;;  %347 = vlog2.f32 %v126_v7 }
 0x131   :  { %349 = vlog2.f32 %v120_v8 }
 0x133   :  { %v130_v9 = vpop.xlane.xlu1 %129 }
 0x134   :  { %v124_v10 = vpop.xlane.xlu0 %123  ;;  %351 = vlog2.f32 %v130_v9 }
 0x135   :  { %353 = vlog2.f32 %v124_v10  ;;  %v342_v11 = vpop.eup %341 }
 0x136   :  { %v190_v17 = vmul.f32 0.6931472, %v342_v11 }
 0x137   :  { %v176_v12 = vpop.xlane.xlu1 %175 }
 0x138   :  { %v128_v13 = vpop.xlane.xlu0 %127 }
 0x139   :  { %355 = vlog2.f32 %v128_v13  ;;  %v344_v14 = vpop.eup %343 }
 0x13a   :  { %v346_v15 = vpop.eup %345  ;;  %v196_v16 = vmul.f32 0.6931472, %v344_v14 }
 0x13b   :  { %v192_v18 = vmul.f32 0.6931472, %v346_v15  ;;  %v180_v20 = vpop.xlane.xlu1 %179 }
 0x13c   :  { %v174_v22 = vpop.xlane.xlu0 %173  ;;  %v208_v24 = vsub.f32 %v196_v16, %v180_v20 }
 0x13d   :  { %v205_v25 = vsub.f32 %v190_v17, %v174_v22  ;;  %v348_v26 = vpop.eup %347  ;;  %v206_v27 = vsub.f32 %v192_v18, %v176_v12 }
 0x13e   :  { %v350_v28 = vpop.eup %349  ;;  %v258_v29 = vadd.f32 %v250_v19, %v208_v24  ;;  %v200_v31 = vmul.f32 0.6931472, %v348_v26 }
 0x13f   :  { %v255_v30 = vadd.f32 %v247_v21, %v205_v25  ;;  %v256_v32 = vadd.f32 %v248_v23, %v206_v27  ;;  %v184_v34 = vpop.xlane.xlu1 %183  ;;  %v194_v35 = vmul.f32 0.6931472, %v350_v28 }
 0x140   :  { %v178_v36 = vpop.xlane.xlu0 %177  ;;  %267 = vst.msk [vmem:[#allocation2 + $0x18] sm:$0xff] %vm48_vm5, %v258_v29  ;;  %v210_v37 = vsub.f32 %v200_v31, %v184_v34 }
 0x141   :  { %264 = vst.msk [vmem:[#allocation2] sm:$0xff] %vm48_vm5, %v255_v30  ;;  %v352_v39 = vpop.eup %351  ;;  %265 = vst.msk [vmem:[#allocation2 + $0x8] sm:$0xff] %vm48_vm5, %v256_v32  ;;  %v207_v40 = vsub.f32 %v194_v35, %v178_v36 }
 0x142   :  { %v354_v41 = vpop.eup %353  ;;  %v260_v42 = vadd.f32 %v252_v33, %v210_v37  ;;  %v204_v43 = vmul.f32 0.6931472, %v352_v39 }
 0x143   :  { %v257_v44 = vadd.f32 %v249_v38, %v207_v40  ;;  %v188_v46 = vpop.xlane.xlu1 %187  ;;  %v198_v47 = vmul.f32 0.6931472, %v354_v41 }
 0x144   :  { %v182_v48 = vpop.xlane.xlu0 %181  ;;  %269 = vst.msk [vmem:[#allocation2 + $0x28] sm:$0xff] %vm48_vm5, %v260_v42  ;;  %v212_v49 = vsub.f32 %v204_v43, %v188_v46 }
 0x145   :  { %266 = vst.msk [vmem:[#allocation2 + $0x10] sm:$0xff] %vm48_vm5, %v257_v44  ;;  %v209_v52 = vsub.f32 %v198_v47, %v182_v48 }
 0x146   :  { %v356_v51 = vpop.eup %355  ;;  %v262_v53 = vadd.f32 %v254_v45, %v212_v49 }
 0x147   :  { %v202_v54 = vmul.f32 0.6931472, %v356_v51  ;;  %v259_v55 = vadd.f32 %v251_v50, %v209_v52  ;;  %v278_v1 = vld [vmem:[#allocation2 + $0x18] sm:$0xff] }
 0x148   :  { %v186_v57 = vpop.xlane.xlu0 %185  ;;  %v275_v58 = vld [vmem:[#allocation2] sm:$0xff]  ;;  %271 = vst.msk [vmem:[#allocation2 + $0x38] sm:$0xff] %vm48_vm5, %v262_v53  ;;  %v276_v60 = vld [vmem:[#allocation2 + $0x8] sm:$0xff]  ;;  %v288_v5 = vsel %vm48_vm5, %v278_v1, 0.0 }
 0x149   :  { %v211_v59 = vsub.f32 %v202_v54, %v186_v57  ;;  %268 = vst.msk [vmem:[#allocation2 + $0x20] sm:$0xff] %vm48_vm5, %v259_v55  ;;  %v283_v61 = vsel %vm48_vm5, %v275_v58, 0.0  ;;  %v284_v62 = vsel %vm48_vm5, %v276_v60, 0.0 }
 0x14a   :  { %v285_v2 = vadd.f32 %v284_v62, %v283_v61 }
 0x14b   :  { %v261_v63 = vadd.f32 %v253_v56, %v211_v59  ;;  %v280_v7 = vld [vmem:[#allocation2 + $0x28] sm:$0xff] }
 0x14c   :  { %v277_v0 = vld [vmem:[#allocation2 + $0x10] sm:$0xff]  ;;  %v292_v12 = vsel %vm48_vm5, %v280_v7, 0.0 }
 0x14d   :  { %270 = vst.msk [vmem:[#allocation2 + $0x30] sm:$0xff] %vm48_vm5, %v261_v63  ;;  %v286_v3 = vsel %vm48_vm5, %v277_v0, 0.0 }
 0x14e   :  { %v287_v4 = vadd.f32 %v286_v3, %v285_v2 }
 0x14f   :  { %v282_v13 = vld [vmem:[#allocation2 + $0x38] sm:$0xff] }
 0x150   :  { %v279_v6 = vld [vmem:[#allocation2 + $0x20] sm:$0xff]  ;;  %v289_v8 = vadd.f32 %v288_v5, %v287_v4  ;;  %v296_v17 = vsel %vm48_vm5, %v282_v13, 0.0 }
 0x151   :  { %v290_v9 = vsel %vm48_vm5, %v279_v6, 0.0 }
 0x152   :  { %v291_v10 = vadd.f32 %v290_v9, %v289_v8 }
 0x154   :  { %v281_v11 = vld [vmem:[#allocation2 + $0x30] sm:$0xff]  ;;  %v293_v14 = vadd.f32 %v292_v12, %v291_v10 }
 0x155   :  { %v294_v15 = vsel %vm48_vm5, %v281_v11, 0.0 }
 0x156   :  { %v295_v16 = vadd.f32 %v294_v15, %v293_v14 }
 0x158   :  { %v297_v18 = vadd.f32 %v296_v17, %v295_v16 }
 0x15a   :  { %v298_v19 = vrot.slane %v297_v18, 4 }
 0x15c   :  { %v299_v20 = vadd.f32 %v298_v19, %v297_v18 }
 0x15e   :  { %v300_v21 = vrot.slane %v299_v20, 2 }
 0x160   :  { %v301_v22 = vadd.f32 %v300_v21, %v299_v20 }
 0x162   :  { %v302_v23 = vrot.slane %v301_v22, 1 }
 0x164   :  { %v303_v24 = vadd.f32 %v302_v23, %v301_v22 }
 0x166   :  { %v304_v25 = vmul.f32 0.015625, %v303_v24 }
 0x168   :  { %307 = vperm.xlu0 %323, %v304_v25  }
 0x1e3   :  { %v308_v26 = vpop.permute.xlu0 %307 }
 0x1e4   :  { %310 = vst [vmem:[%s459_s2] sm:$0xff] %v308_v26 }

</bundles_post_ra>
